<compile_context>
chip_gen: v5e
topology: v5e:2x2
jax: 0.10.0
libtpu: 0.0.40
codegen_flags: <defaults>
</compile_context>

<pallas_src>
import functools

import jax
import jax.numpy as jnp
from jax.experimental import pallas as pl
from jax.experimental.pallas import tpu as pltpu


def _round_up(n, m):
    return ((n + m - 1) // m) * m


def _tpu_tuning():
    """Per-generation knobs: (batch-tile cap, split batch for dual-TC, bf16 epilogue)."""
    try:
        kind = jax.devices()[0].device_kind.lower()
    except Exception:  # pragma: no cover - defensive; fall back to conservative settings
        kind = ""
    new_gen = ("v6" in kind) or ("v7" in kind)
    cap = 256 if new_gen else 128   # v6e/v7x MXUs are 256-tall; v5e and older are 128x128
    split = "v7" in kind            # v7x has 2 TensorCores; give the parallel axis >=2 steps
    bf16_epilogue = new_gen         # v6e/v7x VPUs are bf16-capable; v5e is not
    return cap, split, bf16_epilogue


def encoder2_kernel(x_ref, w1_ref, w2_ref, w3_ref, b_ref, o_ref, *, h1_p, h2_p,
                    bf16_epilogue):
    # x arrives f32; cast to bf16 for the MXU.  Accumulate in f32, bias-add in f32.
    x = x_ref[...].astype(jnp.bfloat16)

    b1 = b_ref[:, :h1_p]
    b2 = b_ref[:, h1_p:h1_p + h2_p]
    b3 = b_ref[:, h1_p + h2_p:]

    def relu_to_bf16(acc_f32):
        # ReLU commutes with the bf16 downcast, so both paths are numerically identical;
        # the bf16 path halves VALU work on bf16-capable VPUs (v6e/v7x).
        if bf16_epilogue:
            return jnp.maximum(acc_f32.astype(jnp.bfloat16), jnp.bfloat16(0.0))
        return jnp.maximum(acc_f32, 0.0).astype(jnp.bfloat16)

    h1 = relu_to_bf16(jnp.dot(x, w1_ref[...], preferred_element_type=jnp.float32) + b1)
    h2 = relu_to_bf16(jnp.dot(h1, w2_ref[...], preferred_element_type=jnp.float32) + b2)
    out = jnp.dot(h2, w3_ref[...], preferred_element_type=jnp.float32) + b3
    o_ref[...] = out.astype(o_ref.dtype)


def prepare_params(params):
    """One-time prep: pad output dims to lane multiples (128), cast weights to bf16,
    concatenate the (f32) biases.  Do this once and reuse across calls."""
    w1, b1, w2, b2, w3, b3 = params
    in_dim = w1.shape[0]
    h1_p = _round_up(w1.shape[1], 128)
    h2_p = _round_up(w2.shape[1], 128)
    lat_p = _round_up(w3.shape[1], 128)

    def pad2(a, rows, cols, dtype):
        out = jnp.zeros((rows, cols), dtype)
        return out.at[: a.shape[0], : a.shape[1]].set(a.astype(dtype))

    bf16, f32 = jnp.bfloat16, jnp.float32
    w1p = pad2(w1, in_dim, h1_p, bf16)            # K left unpadded; MXU pads internally
    w2p = pad2(w2, h1_p, h2_p, bf16)
    w3p = pad2(w3, h2_p, lat_p, bf16)
    b1p = pad2(b1.reshape(1, -1), 1, h1_p, f32)
    b2p = pad2(b2.reshape(1, -1), 1, h2_p, f32)
    b3p = pad2(b3.reshape(1, -1), 1, lat_p, f32)
    bcat = jnp.concatenate([b1p, b2p, b3p], axis=1)
    return (w1p, w2p, w3p, bcat)


@functools.partial(jax.jit, static_argnames=("latent",))
def encoder2_forward(x, prepared, *, latent):
    """x: (B, input_size) f32.  prepared: output of prepare_params(params)."""
    w1p, w2p, w3p, bcat = prepared
    B, in_dim = x.shape
    h1_p = w1p.shape[1]
    h2_p = w2p.shape[1]
    lat_p = w3p.shape[1]

    cap, split, bf16_epilogue = _tpu_tuning()

    # Batch tiling: sublane-aligned, generation-dependent cap; >=2 steps on v7x if possible.
    b8 = _round_up(B, 8)
    tile_b = min(cap, b8)
    if split and b8 >= 16 and b8 <= tile_b:
        tile_b = _round_up((b8 + 1) // 2, 8)
    b_p = _round_up(b8, tile_b)

    # Only pad the batch (zeros), and only when needed; feature dim stays at in_dim.
    if b_p != B:
        xp = jnp.zeros((b_p, in_dim), x.dtype).at[:B, :].set(x)
    else:
        xp = x

    grid = (b_p // tile_b,)

    flops = 2 * b_p * (in_dim * h1_p + h1_p * h2_p + h2_p * lat_p)
    bytes_accessed = (
        xp.size * 4
        + (w1p.size + w2p.size + w3p.size) * 2
        + bcat.size * 4
        + b_p * lat_p * 4
    )

    kernel = functools.partial(
        encoder2_kernel, h1_p=h1_p, h2_p=h2_p, bf16_epilogue=bf16_epilogue
    )

    out_padded = pl.pallas_call(
        kernel,
        out_shape=jax.ShapeDtypeStruct((b_p, lat_p), x.dtype),
        grid=grid,
        in_specs=[
            pl.BlockSpec((tile_b, in_dim), lambda i: (i, 0)),          # x: tiled over batch
            pl.BlockSpec((in_dim, h1_p), lambda i: (0, 0)),            # weights: VMEM-resident
            pl.BlockSpec((h1_p, h2_p), lambda i: (0, 0)),
            pl.BlockSpec((h2_p, lat_p), lambda i: (0, 0)),
            pl.BlockSpec((1, h1_p + h2_p + lat_p), lambda i: (0, 0)),  # concatenated biases
        ],
        out_specs=pl.BlockSpec((tile_b, lat_p), lambda i: (i, 0)),
        compiler_params=pltpu.CompilerParams(dimension_semantics=("parallel",)),
        cost_estimate=pl.CostEstimate(
            flops=flops, transcendentals=0, bytes_accessed=bytes_accessed
        ),
    )(xp, w1p, w2p, w3p, bcat)

    return out_padded[:B, :latent]


def init_params(key, input_size, h1, h2, latent, dtype=jnp.float32):
    """PyTorch nn.Linear default init U(-1/sqrt(fan_in), 1/sqrt(fan_in)); weights stored (in, out)."""
    def linear_init(k, fan_in, fan_out):
        kw, kb = jax.random.split(k)
        bound = 1.0 / jnp.sqrt(jnp.asarray(fan_in, dtype))
        w = jax.random.uniform(kw, (fan_in, fan_out), dtype, -bound, bound)
        b = jax.random.uniform(kb, (1, fan_out), dtype, -bound, bound)
        return w, b

    k1, k2, k3 = jax.random.split(key, 3)
    w1, b1 = linear_init(k1, input_size, h1)
    w2, b2 = linear_init(k2, h1, h2)
    w3, b3 = linear_init(k3, h2, latent)
    return (w1, b1, w2, b2, w3, b3)


def encoder2_reference(x, params):
    """Reference emulating the kernel's bf16 matmul operands / f32 accumulation + epilogue."""
    w1, b1, w2, b2, w3, b3 = params
    bf16, f32 = jnp.bfloat16, jnp.float32
    h1 = jnp.maximum(
        jnp.dot(x.astype(bf16), w1.astype(bf16), preferred_element_type=f32) + b1, 0.0
    )
    h2 = jnp.maximum(
        jnp.dot(h1.astype(bf16), w2.astype(bf16), preferred_element_type=f32) + b2, 0.0
    )
    return jnp.dot(h2.astype(bf16), w3.astype(bf16), preferred_element_type=f32) + b3


if __name__ == "__main__":
    # Shapes consistent with the module: batch=8, input_size=64,
    # hidden_size_1=400, hidden_size_2=169, latent_size=2.
    B, input_size = 8, 64
    hidden_size_1, hidden_size_2, latent_size = 400, 169, 2

    key = jax.random.PRNGKey(0)
    kx, kp = jax.random.split(key)
    x = jax.random.normal(kx, (B, input_size), jnp.float32)
    params = init_params(kp, input_size, hidden_size_1, hidden_size_2, latent_size)

    prepared = jax.block_until_ready(prepare_params(params))  # one-time prep, out of hot path

    out = jax.block_until_ready(encoder2_forward(x, prepared, latent=latent_size))
    ref = encoder2_reference(x, params)

    assert out.shape == (B, latent_size), out.shape
    assert jnp.allclose(out, ref, atol=1e-3, rtol=1e-3), "mismatch vs bf16-emulated reference"
    print("KERNEL_OK")
</pallas_src>

<mosaic_0001>
module attributes {stable_mosaic.version = 11 : i64} {
  func.func @encoder2_kernel(%arg0: i32, %arg1: memref<8x64xf32, #tpu.memory_space<vmem>>, %arg2: memref<64x512xbf16, #tpu.memory_space<vmem>>, %arg3: memref<512x256xbf16, #tpu.memory_space<vmem>>, %arg4: memref<256x128xbf16, #tpu.memory_space<vmem>>, %arg5: memref<1x896xf32, #tpu.memory_space<vmem>>, %arg6: memref<8x128xf32, #tpu.memory_space<vmem>>) attributes {dimension_semantics = [#tpu.dimension_semantics<parallel>], iteration_bounds = array<i64: 1>, scalar_prefetch = 0 : i64, scratch_operands = 0 : i64, tpu.core_type = #tpu.core_type<tc>, window_params = [{transform_indices = @transform_0, window_bounds = array<i64: 8, 64>}, {pipeline_mode = #tpu.pipeline_mode<synchronous>, transform_indices = @transform_1, window_bounds = array<i64: 64, 512>}, {pipeline_mode = #tpu.pipeline_mode<synchronous>, transform_indices = @transform_2, window_bounds = array<i64: 512, 256>}, {pipeline_mode = #tpu.pipeline_mode<synchronous>, transform_indices = @transform_3, window_bounds = array<i64: 256, 128>}, {pipeline_mode = #tpu.pipeline_mode<synchronous>, transform_indices = @transform_4, window_bounds = array<i64: 1, 896>}, {transform_indices = @transform_5, window_bounds = array<i64: 8, 128>}]} {
    %c0 = arith.constant 0 : index
    %c0_0 = arith.constant 0 : index
    %0 = vector.load %arg1[%c0, %c0_0] : memref<8x64xf32, #tpu.memory_space<vmem>>, vector<8x64xf32>
    %1 = arith.truncf %0 : vector<8x64xf32> to vector<8x64xbf16>
    %c0_1 = arith.constant 0 : index
    %c0_2 = arith.constant 0 : index
    %2 = vector.load %arg5[%c0_1, %c0_2] : memref<1x896xf32, #tpu.memory_space<vmem>>, vector<1x512xf32>
    %c0_3 = arith.constant 0 : index
    %c512 = arith.constant 512 : index
    %3 = vector.load %arg5[%c0_3, %c512] : memref<1x896xf32, #tpu.memory_space<vmem>>, vector<1x256xf32>
    %c0_4 = arith.constant 0 : index
    %c768 = arith.constant 768 : index
    %4 = vector.load %arg5[%c0_4, %c768] : memref<1x896xf32, #tpu.memory_space<vmem>>, vector<1x128xf32>
    %c0_5 = arith.constant 0 : index
    %c0_6 = arith.constant 0 : index
    %5 = vector.load %arg2[%c0_5, %c0_6] : memref<64x512xbf16, #tpu.memory_space<vmem>>, vector<64x512xbf16>
    %cst = arith.constant dense<0.000000e+00> : vector<8x512xf32>
    %6 = tpu.matmul %1, %5, %cst {dimension_numbers = #tpu.dot_dimension_numbers<[1], [0], [0], [1], [0, 0, 1, 1], [], []>} : vector<8x64xbf16>, vector<64x512xbf16>, vector<8x512xf32> -> vector<8x512xf32>
    %7 = vector.broadcast %2 : vector<1x512xf32> to vector<8x512xf32>
    %8 = arith.addf %6, %7 : vector<8x512xf32>
    %cst_7 = arith.constant 0.000000e+00 : f32
    %9 = vector.broadcast %cst_7 : f32 to vector<8x512xf32>
    %10 = arith.maximumf %8, %9 : vector<8x512xf32>
    %11 = arith.truncf %10 : vector<8x512xf32> to vector<8x512xbf16>
    %c0_8 = arith.constant 0 : index
    %c0_9 = arith.constant 0 : index
    %12 = vector.load %arg3[%c0_8, %c0_9] : memref<512x256xbf16, #tpu.memory_space<vmem>>, vector<512x256xbf16>
    %cst_10 = arith.constant dense<0.000000e+00> : vector<8x256xf32>
    %13 = tpu.matmul %11, %12, %cst_10 {dimension_numbers = #tpu.dot_dimension_numbers<[1], [0], [0], [1], [0, 0, 1, 1], [], []>} : vector<8x512xbf16>, vector<512x256xbf16>, vector<8x256xf32> -> vector<8x256xf32>
    %14 = vector.broadcast %3 : vector<1x256xf32> to vector<8x256xf32>
    %15 = arith.addf %13, %14 : vector<8x256xf32>
    %cst_11 = arith.constant 0.000000e+00 : f32
    %16 = vector.broadcast %cst_11 : f32 to vector<8x256xf32>
    %17 = arith.maximumf %15, %16 : vector<8x256xf32>
    %18 = arith.truncf %17 : vector<8x256xf32> to vector<8x256xbf16>
    %c0_12 = arith.constant 0 : index
    %c0_13 = arith.constant 0 : index
    %19 = vector.load %arg4[%c0_12, %c0_13] : memref<256x128xbf16, #tpu.memory_space<vmem>>, vector<256x128xbf16>
    %cst_14 = arith.constant dense<0.000000e+00> : vector<8x128xf32>
    %20 = tpu.matmul %18, %19, %cst_14 {dimension_numbers = #tpu.dot_dimension_numbers<[1], [0], [0], [1], [0, 0, 1, 1], [], []>} : vector<8x256xbf16>, vector<256x128xbf16>, vector<8x128xf32> -> vector<8x128xf32>
    %21 = vector.broadcast %4 : vector<1x128xf32> to vector<8x128xf32>
    %22 = arith.addf %20, %21 : vector<8x128xf32>
    %c0_15 = arith.constant 0 : index
    %c0_16 = arith.constant 0 : index
    %23 = vector.load %arg6[%c0_15, %c0_16] : memref<8x128xf32, #tpu.memory_space<vmem>>, vector<8x128xf32>
    tpu.vector_store %arg6[%c0_15, %c0_16], %22 {strides = array<i32>} : memref<8x128xf32, #tpu.memory_space<vmem>>, vector<8x128xf32>,
    return
  }
  func.func @transform_0(%arg0: i32) -> (i32, i32) {
    %c0_i32 = arith.constant 0 : i32
    %c0_i32_0 = arith.constant 0 : i32
    return %arg0, %c0_i32 : i32, i32
  }
  func.func @transform_1(%arg0: i32) -> (i32, i32) {
    %c0_i32 = arith.constant 0 : i32
    %c0_i32_0 = arith.constant 0 : i32
    %c0_i32_1 = arith.constant 0 : i32
    return %c0_i32, %c0_i32_0 : i32, i32
  }
  func.func @transform_2(%arg0: i32) -> (i32, i32) {
    %c0_i32 = arith.constant 0 : i32
    %c0_i32_0 = arith.constant 0 : i32
    %c0_i32_1 = arith.constant 0 : i32
    return %c0_i32, %c0_i32_0 : i32, i32
  }
  func.func @transform_3(%arg0: i32) -> (i32, i32) {
    %c0_i32 = arith.constant 0 : i32
    %c0_i32_0 = arith.constant 0 : i32
    %c0_i32_1 = arith.constant 0 : i32
    return %c0_i32, %c0_i32_0 : i32, i32
  }
  func.func @transform_4(%arg0: i32) -> (i32, i32) {
    %c0_i32 = arith.constant 0 : i32
    %c0_i32_0 = arith.constant 0 : i32
    %c0_i32_1 = arith.constant 0 : i32
    return %c0_i32, %c0_i32_0 : i32, i32
  }
  func.func @transform_5(%arg0: i32) -> (i32, i32) {
    %c0_i32 = arith.constant 0 : i32
    %c0_i32_0 = arith.constant 0 : i32
    return %arg0, %c0_i32 : i32, i32
  }
}

</mosaic_0001>

<bundles_post_ra>
// kernel: encoder2_forward.1
= control target key start
LH: loop header
LB: loop body
LE: loop exit
PB: predicated region body
PF: predicated region fallthrough
CT: control target
= control target key end

     0   :  { %10 = vsyncpa [#allocation3], 0  ;;  %s1622_s0 = inlined_call_operand.hbm [shape: f32[8,64], index: 0, kind: input, shape index: {}]   ;;  %s1623_s1 = inlined_call_operand.hbm [shape: bf16[64,512], index: 1, kind: input, shape index: {}]   ;;  %s1624_s2 = inlined_call_operand.hbm [shape: bf16[512,256], index: 2, kind: input, shape index: {}]   ;;  %s1625_s3 = inlined_call_operand.hbm [shape: bf16[256,128], index: 3, kind: input, shape index: {}]   ;;  %s1626_s4 = inlined_call_operand.hbm [shape: f32[1,896], index: 4, kind: input, shape index: {}]   ;;  %s1627_s5 = inlined_call_operand.vmem [shape: f32[8,128], index: 5, kind: output, shape index: {}]  }
   0x1   :  { %11 = vsyncpa [#allocation5], 0  ;;  %s28_s20 = sshll.u32 %s1623_s1, 4  ;;  %s29_s20 = int_to_ptr.hbm [resolvable:$true] %s28_s20 }
   0x2   :  { %12 = vsyncpa [#allocation8], 0  ;;  %s1553_s21 = smov [#allocation4]   ;;  %s54_s25 = sshll.u32 %s1625_s3, 4  ;;  %s55_s25 = int_to_ptr.hbm [resolvable:$true] %s54_s25 }
   0x3   :  { %s30_s22 = sshll.u32 %s1553_s21, 4  ;;  %s1554_s26 = smov 256   ;;  %s31_s22 = int_to_ptr.vmem [resolvable:$true] %s30_s22 }
   0x4   :  { %s1555_s27 = smov 16   ;;  %s1556_s28 = smov [#allocation7]  }
   0x5   :  { %36 = dma.hbm_to_vmem [thread:$0]  %s29_s20, 2048, %s31_s22, [#allocation5], %s1554_s26, %s1554_s26, %s1555_s27  }
   0x6   :  { %s56_s29 = sshll.u32 %s1556_s28, 4  ;;  %s1557_s30 = smov 64   ;;  %s57_s29 = int_to_ptr.vmem [resolvable:$true] %s56_s29 }
   0x7   :  { %s1558_s6 = smov 4   ;;  %s18_s8 = sshll.u32 %s1622_s0, 4  ;;  %s19_s8 = int_to_ptr.hbm [resolvable:$true] %s18_s8 }
   0x8   :  { %62 = dma.hbm_to_vmem [thread:$0]  %s55_s25, 2048, %s57_s29, [#allocation8], %s1557_s30, %s1557_s30, %s1558_s6  }
   0x9   :  { %s1559_s9 = smov [#allocation2]   ;;  %s41_s12 = sshll.u32 %s1624_s2, 4  ;;  %s42_s12 = int_to_ptr.hbm [resolvable:$true] %s41_s12 }
   0xa   :  { %s20_s10 = sshll.u32 %s1559_s9, 4  ;;  %s1560_s13 = smov [#allocation6]   ;;  %s21_s10 = int_to_ptr.vmem [resolvable:$true] %s20_s10 }
   0xb   :  { %23 = dma.hbm_to_vmem [thread:$0]  %s19_s8, 128, %s21_s10, [#allocation3]  }
   0xc   :  { %s43_s14 = sshll.u32 %s1560_s13, 4  ;;  %s1561_s15 = smov 128   ;;  %s44_s14 = int_to_ptr.vmem [resolvable:$true] %s43_s14 }
   0xd   :  { %s1562_s16 = smov 8   ;;  %s68_s0 = sshll.u32 %s1626_s4, 4  ;;  %s69_s0 = int_to_ptr.hbm [resolvable:$true] %s68_s0 }
   0xe   :  { %49 = dma.hbm_to_vmem [thread:$0]  %s42_s12, 8192, %s44_s14, [#allocation5], %s1561_s15, %s1561_s15, %s1562_s16  }
   0xf   :  { %s1563_s19 = smov [#allocation9]  }
  0x10   :  { %s70_s20 = sshll.u32 %s1563_s19, 4  ;;  %s71_s20 = int_to_ptr.vmem [resolvable:$true] %s70_s20 }
  0x11   :  { %73 = dma.hbm_to_vmem [thread:$0]  %s69_s0, 112, %s71_s20, [#allocation8]  }
  0x12   :  { %1547 = dma.done.wait [#allocation3], 128  }
  0x13   :  { %1548 = vsyncadd [#allocation3], 4294967168 }
  0x14   :  { %1549 = dma.done.wait [#allocation5], 10240  }
  0x15   :  { %1550 = vsyncadd [#allocation5], 4294957056 }
  0x16   :  { %1551 = dma.done.wait [#allocation8], 2160  }
  0x17   :  { %1552 = vsyncadd [#allocation8], 4294965136  ;;  %v981_v0 = vld [vmem:[#allocation4 + $0x60] sm:$0xf]  ;;  %v1333_v1 = vld [vmem:[#allocation4 + $0x6c] sm:$0xf0] }
  0x18   :  { %v1331_v2 = vld [vmem:[#allocation4 + $0x64] sm:$0xf]  ;;  %v982_v3 = vor.u32 %v1333_v1, %v981_v0  ;;  %v983_v4 = vld [vmem:[#allocation4 + $0x70] sm:$0xf0]  ;;  %v965_v5 = vld [vmem:[#allocation4 + $0x40] sm:$0xf] }
  0x19   :  { %v1329_v6 = vld [vmem:[#allocation4 + $0x4c] sm:$0xf0]  ;;  %v986_v7 = vor.u32 %v1331_v2, %v983_v4  ;;  %v1327_v8 = vld [vmem:[#allocation4 + $0x44] sm:$0xf]  ;;  %v967_v9 = vld [vmem:[#allocation4 + $0x50] sm:$0xf0] }
  0x1a   :  { %213 = vmatpush.bf16.msra.mxu2 %v982_v3  ;;  %v966_v10 = vor.u32 %v1329_v6, %v965_v5  ;;  %v970_v11 = vor.u32 %v1327_v8, %v967_v9  ;;  %v949_v12 = vld [vmem:[#allocation4 + $0x20] sm:$0xf]  ;;  %v1325_v13 = vld [vmem:[#allocation4 + $0x2c] sm:$0xf0]  ;;  %v1323_v14 = vld [vmem:[#allocation4 + $0x24] sm:$0xf] }
  0x1b   :  { %226 = vmatpush.bf16.msra.mxu3 %v986_v7  ;;  %v951_v15 = vld [vmem:[#allocation4 + $0x30] sm:$0xf0]  ;;  %v950_v16 = vor.u32 %v1325_v13, %v949_v12  ;;  %v933_v18 = vld [vmem:[#allocation4] sm:$0xf]  ;;  %v1321_v19 = vld [vmem:[#allocation4 + $0xc] sm:$0xf0] }
  0x1c   :  { %v954_v17 = vor.u32 %v1323_v14, %v951_v15  ;;  %v1319_v20 = vld [vmem:[#allocation4 + $0x4] sm:$0xf]  ;;  %v935_v21 = vld [vmem:[#allocation4 + $0x10] sm:$0xf0]  ;;  %v989_v22 = vld [vmem:[#allocation4 + $0x68] sm:$0xf]  ;;  %v934_v27 = vor.u32 %v1321_v19, %v933_v18 }
  0x1d   :  { %v1334_v23 = vld [vmem:[#allocation4 + $0x74] sm:$0xf0]  ;;  %v1332_v25 = vld [vmem:[#allocation4 + $0x6c] sm:$0xf]  ;;  %v991_v26 = vld [vmem:[#allocation4 + $0x78] sm:$0xf0]  ;;  %v938_v32 = vor.u32 %v1319_v20, %v935_v21 }
  0x1e   :  { %214 = vmatpush.bf16.msra.mxu2 %v966_v10  ;;  %v95_v24 = vld [vmem:[#allocation2] sm:$0xff]  ;;  %v973_v28 = vld [vmem:[#allocation4 + $0x48] sm:$0xf]  ;;  %v1057_v29 = vld [vmem:[#allocation6 + $0x70] sm:$0xf]  ;;  %v990_v33 = vor.u32 %v1334_v23, %v989_v22  ;;  %v994_v38 = vor.u32 %v1332_v25, %v991_v26  ;;  %vm205_vm0 = vcmask 523264  }
  0x1f   :  { %227 = vmatpush.bf16.msra.mxu3 %v970_v11  ;;  %v1350_v30 = vld [vmem:[#allocation6 + $0x74] sm:$0xf0]  ;;  %v1121_v31 = vld [vmem:[#allocation6 + $0xf0] sm:$0xf]  ;;  %v1049_v36 = vld [vmem:[#allocation6 + $0x60] sm:$0xf]  ;;  %v1609_v43 = vpack.c.bf16 %v95_v24, %v95_v24 }
  0x20   :  { %v1058_v34 = vor.u32 %v1350_v30, %v1057_v29  ;;  %v1366_v35 = vld [vmem:[#allocation6 + $0xf4] sm:$0xf0]  ;;  %v1348_v37 = vld [vmem:[#allocation6 + $0x64] sm:$0xf0]  ;;  %v1113_v41 = vld [vmem:[#allocation6 + $0xe0] sm:$0xf] }
  0x21   :  { %v1330_v39 = vld [vmem:[#allocation4 + $0x54] sm:$0xf0]  ;;  %v1122_v40 = vor.u32 %v1366_v35, %v1121_v31  ;;  %v1364_v42 = vld [vmem:[#allocation6 + $0xe4] sm:$0xf0]  ;;  %v1328_v44 = vld [vmem:[#allocation4 + $0x4c] sm:$0xf]  ;;  %v1050_v46 = vor.u32 %v1348_v37, %v1049_v36 }
  0x22   :  { %215 = vmatpush.bf16.msra.mxu2 %v950_v16  ;;  %v975_v45 = vld [vmem:[#allocation4 + $0x58] sm:$0xf0]  ;;  %658 = vmatpush.bf16.msra.mxu0 %v1058_v34  ;;  %v1114_v47 = vor.u32 %v1364_v42, %v1113_v41  ;;  %v1041_v48 = vld [vmem:[#allocation6 + $0x50] sm:$0xf]  ;;  %v1346_v49 = vld [vmem:[#allocation6 + $0x54] sm:$0xf0]  ;;  %v974_v50 = vor.u32 %v1330_v39, %v973_v28 }
  0x23   :  { %228 = vmatpush.bf16.msra.mxu3 %v954_v17  ;;  %671 = vmatpush.bf16.msra.mxu1 %v1122_v40  ;;  %v1105_v51 = vld [vmem:[#allocation6 + $0xd0] sm:$0xf]  ;;  %v1362_v52 = vld [vmem:[#allocation6 + $0xd4] sm:$0xf0]  ;;  %v978_v53 = vor.u32 %v1328_v44, %v975_v45  ;;  %v957_v54 = vld [vmem:[#allocation4 + $0x28] sm:$0xf]  ;;  %v1042_v58 = vor.u32 %v1346_v49, %v1041_v48 }
  0x24   :  { %v1326_v55 = vld [vmem:[#allocation4 + $0x34] sm:$0xf0]  ;;  %v1324_v56 = vld [vmem:[#allocation4 + $0x2c] sm:$0xf]  ;;  %v959_v57 = vld [vmem:[#allocation4 + $0x38] sm:$0xf0]  ;;  %v1106_v59 = vor.u32 %v1362_v52, %v1105_v51 }
  0x25   :  { %v1033_v60 = vld [vmem:[#allocation6 + $0x40] sm:$0xf]  ;;  %v1344_v61 = vld [vmem:[#allocation6 + $0x44] sm:$0xf0]  ;;  %v958_v62 = vor.u32 %v1326_v55, %v957_v54  ;;  %v962_v2 = vor.u32 %v1324_v56, %v959_v57  ;;  %v1322_v3 = vld [vmem:[#allocation4 + $0x14] sm:$0xf0] }
  0x26   :  { %216 = vmatpush.bf16.msra.mxu2 %v934_v27  ;;  %659 = vmatpush.bf16.msra.mxu0 %v1050_v46  ;;  %v941_v63 = vld [vmem:[#allocation4 + $0x8] sm:$0xf]  ;;  %v1097_v0 = vld [vmem:[#allocation6 + $0xc0] sm:$0xf]  ;;  %v1320_v4 = vld [vmem:[#allocation4 + $0xc] sm:$0xf]  ;;  %v1034_v6 = vor.u32 %v1344_v61, %v1033_v60 }
  0x27   :  { %229 = vmatpush.bf16.msra.mxu3 %v938_v32  ;;  %672 = vmatpush.bf16.msra.mxu1 %v1114_v47  ;;  %v1360_v1 = vld [vmem:[#allocation6 + $0xc4] sm:$0xf0]  ;;  %v943_v5 = vld [vmem:[#allocation4 + $0x18] sm:$0xf0]  ;;  %v1025_v7 = vld [vmem:[#allocation6 + $0x30] sm:$0xf]  ;;  %v942_v14 = vor.u32 %v1322_v3, %v941_v63 }
  0x28   :  { %v1185_v8 = vld [vmem:[#allocation6 + $0x170] sm:$0xf]  ;;  %v1382_v9 = vld [vmem:[#allocation6 + $0x174] sm:$0xf0]  ;;  %v1098_v10 = vor.u32 %v1360_v1, %v1097_v0  ;;  %v946_v17 = vor.u32 %v1320_v4, %v943_v5  ;;  %v1177_v21 = vld [vmem:[#allocation6 + $0x160] sm:$0xf] }
  0x29   :  { %995 = vmatmul.msk.bf16.vlgmr.msra.gmra.mxu2 %vm205_vm0, %v1609_v43  ;;  %v1342_v11 = vld [vmem:[#allocation6 + $0x34] sm:$0xf0]  ;;  %v1249_v12 = vld [vmem:[#allocation6 + $0x1f0] sm:$0xf]  ;;  %v1186_v18 = vor.u32 %v1382_v9, %v1185_v8  ;;  %v1380_v22 = vld [vmem:[#allocation6 + $0x164] sm:$0xf0] }
  0x2a   :  { %239 = vmatpush.bf16.msrb.mxu2 %v990_v33  ;;  %996 = vmatmul.msk.bf16.vlgmr.msra.gmra.mxu3 %vm205_vm0, %v1609_v43  ;;  %v1398_v13 = vld [vmem:[#allocation6 + $0x1f4] sm:$0xf0]  ;;  %v1089_v15 = vld [vmem:[#allocation6 + $0xb0] sm:$0xf]  ;;  %v1026_v19 = vor.u32 %v1342_v11, %v1025_v7  ;;  %v1017_v24 = vld [vmem:[#allocation6 + $0x20] sm:$0xf]  ;;  %v1178_v28 = vor.u32 %v1380_v22, %v1177_v21 }
  0x2b   :  { %252 = vmatpush.bf16.msrb.mxu3 %v994_v38  ;;  %660 = vmatpush.bf16.msra.mxu0 %v1042_v58  ;;  %v1358_v16 = vld [vmem:[#allocation6 + $0xb4] sm:$0xf0]  ;;  %v1250_v20 = vor.u32 %v1398_v13, %v1249_v12  ;;  %v1340_v25 = vld [vmem:[#allocation6 + $0x24] sm:$0xf0]  ;;  %v1081_v26 = vld [vmem:[#allocation6 + $0xa0] sm:$0xf] }
  0x2c   :  { %673 = vmatpush.bf16.msra.mxu1 %v1106_v59  ;;  %v1090_v23 = vor.u32 %v1358_v16, %v1089_v15  ;;  %v1356_v27 = vld [vmem:[#allocation6 + $0xa4] sm:$0xf0]  ;;  %v1241_v29 = vld [vmem:[#allocation6 + $0x1e0] sm:$0xf]  ;;  %v1018_v31 = vor.u32 %v1340_v25, %v1017_v24  ;;  %v1169_v32 = vld [vmem:[#allocation6 + $0x150] sm:$0xf] }
  0x2d   :  { %v1396_v30 = vld [vmem:[#allocation6 + $0x1e4] sm:$0xf0]  ;;  %v1378_v33 = vld [vmem:[#allocation6 + $0x154] sm:$0xf0]  ;;  %v1082_v34 = vor.u32 %v1356_v27, %v1081_v26  ;;  %v1009_v35 = vld [vmem:[#allocation6 + $0x10] sm:$0xf] }
  0x2e   :  { %240 = vmatpush.bf16.msrb.mxu2 %v974_v50  ;;  %v1338_v36 = vld [vmem:[#allocation6 + $0x14] sm:$0xf0]  ;;  %v1242_v37 = vor.u32 %v1396_v30, %v1241_v29  ;;  %v1073_v38 = vld [vmem:[#allocation6 + $0x90] sm:$0xf]  ;;  %v1170_v40 = vor.u32 %v1378_v33, %v1169_v32  ;;  %v1001_v45 = vld [vmem:[#allocation6] sm:$0xf] }
  0x2f   :  { %253 = vmatpush.bf16.msrb.mxu3 %v978_v53  ;;  %661 = vmatpush.bf16.msra.mxu0 %v1034_v6  ;;  %v1354_v39 = vld [vmem:[#allocation6 + $0x94] sm:$0xf0]  ;;  %v1233_v41 = vld [vmem:[#allocation6 + $0x1d0] sm:$0xf]  ;;  %v1010_v44 = vor.u32 %v1338_v36, %v1009_v35  ;;  %v1161_v46 = vld [vmem:[#allocation6 + $0x140] sm:$0xf] }
  0x30   :  { %674 = vmatpush.bf16.msra.mxu1 %v1098_v10  ;;  %v1394_v42 = vld [vmem:[#allocation6 + $0x1d4] sm:$0xf0]  ;;  %v1376_v47 = vld [vmem:[#allocation6 + $0x144] sm:$0xf0]  ;;  %v1074_v48 = vor.u32 %v1354_v39, %v1073_v38  ;;  %v1065_v50 = vld [vmem:[#allocation6 + $0x80] sm:$0xf] }
  0x31   :  { %v1336_v49 = vld [vmem:[#allocation6 + $0x4] sm:$0xf0]  ;;  %v1234_v52 = vor.u32 %v1394_v42, %v1233_v41  ;;  %v1225_v53 = vld [vmem:[#allocation6 + $0x1c0] sm:$0xf]  ;;  %v1349_v54 = vld [vmem:[#allocation6 + $0x74] sm:$0xf]  ;;  %v1162_v56 = vor.u32 %v1376_v47, %v1161_v46 }
  0x32   :  { %241 = vmatpush.bf16.msrb.mxu2 %v958_v62  ;;  %v1352_v51 = vld [vmem:[#allocation6 + $0x84] sm:$0xf0]  ;;  %v1059_v55 = vld [vmem:[#allocation6 + $0x78] sm:$0xf0]  ;;  %v1365_v58 = vld [vmem:[#allocation6 + $0xf4] sm:$0xf]  ;;  %v1002_v60 = vor.u32 %v1336_v49, %v1001_v45 }
  0x33   :  { %254 = vmatpush.bf16.msrb.mxu3 %v962_v2  ;;  %662 = vmatpush.bf16.msra.mxu0 %v1026_v19  ;;  %v1392_v57 = vld [vmem:[#allocation6 + $0x1c4] sm:$0xf0]  ;;  %v1123_v59 = vld [vmem:[#allocation6 + $0xf8] sm:$0xf0]  ;;  %v1153_v61 = vld [vmem:[#allocation6 + $0x130] sm:$0xf]  ;;  %v1062_v63 = vor.u32 %v1349_v54, %v1059_v55 }
  0x34   :  { %675 = vmatpush.bf16.msra.mxu1 %v1090_v23  ;;  %v1374_v62 = vld [vmem:[#allocation6 + $0x134] sm:$0xf0]  ;;  %v1226_v0 = vor.u32 %v1392_v57, %v1225_v53  ;;  %v1126_v1 = vor.u32 %v1365_v58, %v1123_v59  ;;  %v1217_v2 = vld [vmem:[#allocation6 + $0x1b0] sm:$0xf]  ;;  %v1347_v3 = vld [vmem:[#allocation6 + $0x64] sm:$0xf] }
  0x35   :  { %v1051_v4 = vld [vmem:[#allocation6 + $0x68] sm:$0xf0]  ;;  %v1154_v5 = vor.u32 %v1374_v62, %v1153_v61  ;;  %v1390_v6 = vld [vmem:[#allocation6 + $0x1b4] sm:$0xf0]  ;;  %v1363_v7 = vld [vmem:[#allocation6 + $0xe4] sm:$0xf] }
  0x36   :  { %242 = vmatpush.bf16.msrb.mxu2 %v942_v14  ;;  %v1115_v8 = vld [vmem:[#allocation6 + $0xe8] sm:$0xf0]  ;;  %v1145_v9 = vld [vmem:[#allocation6 + $0x120] sm:$0xf]  ;;  %v1372_v10 = vld [vmem:[#allocation6 + $0x124] sm:$0xf0]  ;;  %v1054_v11 = vor.u32 %v1347_v3, %v1051_v4  ;;  %v1218_v12 = vor.u32 %v1390_v6, %v1217_v2 }
  0x37   :  { %255 = vmatpush.bf16.msrb.mxu3 %v946_v17  ;;  %663 = vmatpush.bf16.msra.mxu0 %v1018_v31  ;;  %v1118_v13 = vor.u32 %v1363_v7, %v1115_v8  ;;  %v1146_v14 = vor.u32 %v1372_v10, %v1145_v9  ;;  %v1209_v15 = vld [vmem:[#allocation6 + $0x1a0] sm:$0xf]  ;;  %v1388_v16 = vld [vmem:[#allocation6 + $0x1a4] sm:$0xf0]  ;;  %v1043_v19 = vld [vmem:[#allocation6 + $0x58] sm:$0xf0] }
  0x38   :  { %676 = vmatpush.bf16.msra.mxu1 %v1082_v34  ;;  %v1210_v17 = vor.u32 %v1388_v16, %v1209_v15  ;;  %v1107_v22 = vld [vmem:[#allocation6 + $0xd8] sm:$0xf0]  ;;  %v1137_v24 = vld [vmem:[#allocation6 + $0x110] sm:$0xf]  ;;  %v1370_v25 = vld [vmem:[#allocation6 + $0x114] sm:$0xf0] }
  0x39   :  { %997 = vmatmul.msk.bf16.vlgmr.msrb.gmra.mxu2 %vm205_vm0, %v1609_v43  ;;  %v1201_v26 = vld [vmem:[#allocation6 + $0x190] sm:$0xf]  ;;  %v1138_v27 = vor.u32 %v1370_v25, %v1137_v24  ;;  %v1343_v29 = vld [vmem:[#allocation6 + $0x44] sm:$0xf]  ;;  %v1035_v30 = vld [vmem:[#allocation6 + $0x48] sm:$0xf0] }
  0x3a   :  { %684 = vmatpush.bf16.msra.mxu2 %v1186_v18  ;;  %998 = vmatmul.msk.bf16.vlgmr.msrb.gmra.mxu3 %vm205_vm0, %v1609_v43  ;;  %v1066_v43 = vor.u32 %v1352_v51, %v1065_v50  ;;  %v1345_v18 = vld [vmem:[#allocation6 + $0x54] sm:$0xf]  ;;  %v1038_v32 = vor.u32 %v1343_v29, %v1035_v30  ;;  %v1359_v33 = vld [vmem:[#allocation6 + $0xc4] sm:$0xf]  ;;  %v1099_v34 = vld [vmem:[#allocation6 + $0xc8] sm:$0xf0] }
  0x3b   :  { %697 = vmatpush.bf16.msra.mxu3 %v1250_v20  ;;  %664 = vmatpush.bf16.msra.mxu0 %v1010_v44  ;;  %v1361_v20 = vld [vmem:[#allocation6 + $0xd4] sm:$0xf]  ;;  %v1046_v21 = vor.u32 %v1345_v18, %v1043_v19  ;;  %v1102_v35 = vor.u32 %v1359_v33, %v1099_v34  ;;  %v1129_v36 = vld [vmem:[#allocation6 + $0x100] sm:$0xf]  ;;  %v1027_v42 = vld [vmem:[#allocation6 + $0x38] sm:$0xf0] }
  0x3c   :  { %677 = vmatpush.bf16.msra.mxu1 %v1074_v48  ;;  %v1110_v23 = vor.u32 %v1361_v20, %v1107_v22  ;;  %v1193_v38 = vld [vmem:[#allocation6 + $0x180] sm:$0xf]  ;;  %v1341_v41 = vld [vmem:[#allocation6 + $0x34] sm:$0xf]  ;;  %v1091_v47 = vld [vmem:[#allocation6 + $0xb8] sm:$0xf0] }
  0x3d   :  { %v1030_v45 = vor.u32 %v1341_v41, %v1027_v42  ;;  %v1357_v46 = vld [vmem:[#allocation6 + $0xb4] sm:$0xf]  ;;  %v1187_v50 = vld [vmem:[#allocation6 + $0x178] sm:$0xf0]  ;;  %v1339_v55 = vld [vmem:[#allocation6 + $0x24] sm:$0xf] }
  0x3e   :  { %685 = vmatpush.bf16.msra.mxu2 %v1178_v28  ;;  %v1386_v28 = vld [vmem:[#allocation6 + $0x194] sm:$0xf0]  ;;  %v1381_v48 = vld [vmem:[#allocation6 + $0x174] sm:$0xf]  ;;  %v1094_v49 = vor.u32 %v1357_v46, %v1091_v47  ;;  %v1355_v57 = vld [vmem:[#allocation6 + $0xa4] sm:$0xf] }
  0x3f   :  { %698 = vmatpush.bf16.msra.mxu3 %v1242_v37  ;;  %665 = vmatpush.bf16.msra.mxu0 %v1002_v60  ;;  %v1202_v31 = vor.u32 %v1386_v28, %v1201_v26  ;;  %v1368_v37 = vld [vmem:[#allocation6 + $0x104] sm:$0xf0]  ;;  %v1397_v51 = vld [vmem:[#allocation6 + $0x1f4] sm:$0xf]  ;;  %v1190_v53 = vor.u32 %v1381_v48, %v1187_v50  ;;  %v1083_v59 = vld [vmem:[#allocation6 + $0xa8] sm:$0xf0] }
  0x40   :  { %678 = vmatpush.bf16.msra.mxu1 %v1066_v43  ;;  %v1130_v39 = vor.u32 %v1368_v37, %v1129_v36  ;;  %v1379_v60 = vld [vmem:[#allocation6 + $0x164] sm:$0xf]  ;;  %v1179_v61 = vld [vmem:[#allocation6 + $0x168] sm:$0xf0]  ;;  %v1086_v62 = vor.u32 %v1355_v57, %v1083_v59  ;;  %v1337_v2 = vld [vmem:[#allocation6 + $0x14] sm:$0xf] }
  0x41   :  { %v1182_v43 = vor.u32 %v1379_v60, %v1179_v61  ;;  %v1011_v3 = vld [vmem:[#allocation6 + $0x18] sm:$0xf0]  ;;  %v1353_v4 = vld [vmem:[#allocation6 + $0x94] sm:$0xf]  ;;  %v1003_v15 = vld [vmem:[#allocation6 + $0x8] sm:$0xf0] }
  0x42   :  { %686 = vmatpush.bf16.msra.mxu2 %v1170_v40  ;;  %v1384_v40 = vld [vmem:[#allocation6 + $0x184] sm:$0xf0]  ;;  %v1075_v6 = vld [vmem:[#allocation6 + $0x98] sm:$0xf0]  ;;  %v1377_v7 = vld [vmem:[#allocation6 + $0x154] sm:$0xf] }
  0x43   :  { %699 = vmatpush.bf16.msra.mxu3 %v1234_v52  ;;  %710 = vmatpush.bf16.msrb.mxu0 %v1062_v63  ;;  %v1194_v44 = vor.u32 %v1384_v40, %v1193_v38  ;;  %v1251_v52 = vld [vmem:[#allocation6 + $0x1f8] sm:$0xf0]  ;;  %v1395_v63 = vld [vmem:[#allocation6 + $0x1e4] sm:$0xf]  ;;  %v1078_v9 = vor.u32 %v1353_v4, %v1075_v6  ;;  %v1067_v18 = vld [vmem:[#allocation6 + $0x88] sm:$0xf0] }
  0x44   :  { %723 = vmatpush.bf16.msrb.mxu1 %v1126_v1  ;;  %v1254_v54 = vor.u32 %v1397_v51, %v1251_v52  ;;  %v1171_v8 = vld [vmem:[#allocation6 + $0x158] sm:$0xf0]  ;;  %v1351_v16 = vld [vmem:[#allocation6 + $0x84] sm:$0xf]  ;;  %v1163_v20 = vld [vmem:[#allocation6 + $0x148] sm:$0xf0] }
  0x45   :  { %v1174_v10 = vor.u32 %v1377_v7, %v1171_v8  ;;  %v1375_v19 = vld [vmem:[#allocation6 + $0x144] sm:$0xf]  ;;  %v1227_v24 = vld [vmem:[#allocation6 + $0x1c8] sm:$0xf0]  ;;  %v1373_v26 = vld [vmem:[#allocation6 + $0x134] sm:$0xf] }
  0x46   :  { %687 = vmatpush.bf16.msra.mxu2 %v1162_v56  ;;  %v1019_v56 = vld [vmem:[#allocation6 + $0x28] sm:$0xf0]  ;;  %v1166_v22 = vor.u32 %v1375_v19, %v1163_v20  ;;  %v1389_v28 = vld [vmem:[#allocation6 + $0x1b4] sm:$0xf]  ;;  %v1219_v30 = vld [vmem:[#allocation6 + $0x1b8] sm:$0xf0] }
  0x47   :  { %700 = vmatpush.bf16.msra.mxu3 %v1226_v0  ;;  %711 = vmatpush.bf16.msrb.mxu0 %v1054_v11  ;;  %v1022_v58 = vor.u32 %v1339_v55, %v1019_v56  ;;  %v1243_v0 = vld [vmem:[#allocation6 + $0x1e8] sm:$0xf0]  ;;  %v1393_v11 = vld [vmem:[#allocation6 + $0x1d4] sm:$0xf]  ;;  %v1387_v34 = vld [vmem:[#allocation6 + $0x1a4] sm:$0xf] }
  0x48   :  { %724 = vmatpush.bf16.msrb.mxu1 %v1118_v13  ;;  %v1246_v1 = vor.u32 %v1395_v63, %v1243_v0  ;;  %v1147_v33 = vld [vmem:[#allocation6 + $0x128] sm:$0xf0]  ;;  %v1139_v40 = vld [vmem:[#allocation6 + $0x118] sm:$0xf0]  ;;  %v1385_v41 = vld [vmem:[#allocation6 + $0x194] sm:$0xf] }
  0x49   :  { %v1211_v36 = vld [vmem:[#allocation6 + $0x1a8] sm:$0xf0]  ;;  %v1203_v42 = vld [vmem:[#allocation6 + $0x198] sm:$0xf0] }
  0x4a   :  { %688 = vmatpush.bf16.msra.mxu2 %v1154_v5  ;;  %v1014_v5 = vor.u32 %v1337_v2, %v1011_v3  ;;  %v1214_v38 = vor.u32 %v1387_v34, %v1211_v36  ;;  %v1206_v47 = vor.u32 %v1385_v41, %v1203_v42  ;;  %v1131_v50 = vld [vmem:[#allocation6 + $0x108] sm:$0xf0] }
  0x4b   :  { %701 = vmatpush.bf16.msra.mxu3 %v1218_v12  ;;  %712 = vmatpush.bf16.msrb.mxu0 %v1046_v21  ;;  %v1235_v12 = vld [vmem:[#allocation6 + $0x1d8] sm:$0xf0]  ;;  %v1070_v21 = vor.u32 %v1351_v16, %v1067_v18  ;;  %v1413_v18 = vld [vmem:[#allocation7 + $0x70] sm:$0xff]  ;;  %v1400_v19 = vld [vmem:[#allocation7 + $0x8] sm:$0xff] }
  0x4c   :  { %725 = vmatpush.bf16.msrb.mxu1 %v1110_v23  ;;  %v1238_v13 = vor.u32 %v1393_v11, %v1235_v12  ;;  %v1391_v23 = vld [vmem:[#allocation6 + $0x1c4] sm:$0xf]  ;;  %v1406_v11 = vld [vmem:[#allocation7 + $0x38] sm:$0xff]  ;;  %v1405_v12 = vld [vmem:[#allocation7 + $0x30] sm:$0xff] }
  0x4d   :  { %v1230_v25 = vor.u32 %v1391_v23, %v1227_v24  ;;  %v1414_v16 = vld [vmem:[#allocation7 + $0x78] sm:$0xff]  ;;  %v1412_v20 = vld [vmem:[#allocation7 + $0x68] sm:$0xff] }
  0x4e   :  { %689 = vmatpush.bf16.msra.mxu2 %v1146_v14  ;;  %v1335_v14 = vld [vmem:[#allocation6 + $0x4] sm:$0xf]  ;;  %v1410_v23 = vld [vmem:[#allocation7 + $0x58] sm:$0xff] }
  0x4f   :  { %702 = vmatpush.bf16.msra.mxu3 %v1210_v17  ;;  %713 = vmatpush.bf16.msrb.mxu0 %v1038_v32  ;;  %v1006_v17 = vor.u32 %v1335_v14, %v1003_v15  ;;  %v1371_v32 = vld [vmem:[#allocation6 + $0x124] sm:$0xf]  ;;  %v1402_v15 = vld [vmem:[#allocation7 + $0x18] sm:$0xff] }
  0x50   :  { %726 = vmatpush.bf16.msrb.mxu1 %v1102_v35  ;;  %v97_v35 = vld [vmem:[#allocation9] sm:$0xf]  ;;  %v1150_v37 = vor.u32 %v1371_v32, %v1147_v33 }
  0x51   :  { %v119_v63 = vperm.slane %v97_v35, 2  ;;  %v120_v0 = vperm.slane %v97_v35, 3  ;;  %v1403_v14 = vld [vmem:[#allocation7 + $0x20] sm:$0xff] }
  0x52   :  { %690 = vmatpush.bf16.msra.mxu2 %v1138_v27  ;;  %v1155_v27 = vld [vmem:[#allocation6 + $0x138] sm:$0xf0] }
  0x53   :  { %703 = vmatpush.bf16.msra.mxu3 %v1202_v31  ;;  %714 = vmatpush.bf16.msrb.mxu0 %v1030_v45  ;;  %v1158_v29 = vor.u32 %v1373_v26, %v1155_v27  ;;  %v1222_v31 = vor.u32 %v1389_v28, %v1219_v30  ;;  %v118_v45 = vperm.slane %v97_v35, 1  ;;  %v1409_v26 = vld [vmem:[#allocation7 + $0x50] sm:$0xff]  ;;  %v1408_v27 = vld [vmem:[#allocation7 + $0x48] sm:$0xff]  ;;  %v98_v30 = vld [vmem:[#allocation9 + $0x4] sm:$0x3] }
  0x54   :  { %727 = vmatpush.bf16.msrb.mxu1 %v1094_v49  ;;  %v1367_v49 = vld [vmem:[#allocation6 + $0x104] sm:$0xf]  ;;  %v334_v32 = vperm.slane %v98_v30, 0 }
  0x55   :  { %v1134_v57 = vor.u32 %v1367_v49, %v1131_v50 }
  0x56   :  { %691 = vmatpush.bf16.msra.mxu2 %v1130_v39  ;;  %v1369_v39 = vld [vmem:[#allocation6 + $0x114] sm:$0xf] }
  0x57   :  { %704 = vmatpush.bf16.msra.mxu3 %v1194_v44  ;;  %715 = vmatpush.bf16.msrb.mxu0 %v1022_v58  ;;  %v117_v44 = vperm.slane %v97_v35, 0  ;;  %v1142_v46 = vor.u32 %v1369_v39, %v1139_v40 }
  0x58   :  { %728 = vmatpush.bf16.msrb.mxu1 %v1086_v62 }
  0x5a   :  { %736 = vmatpush.bf16.msrb.mxu2 %v1190_v53  ;;  %v1383_v53 = vld [vmem:[#allocation6 + $0x184] sm:$0xf] }
  0x5b   :  { %749 = vmatpush.bf16.msrb.mxu3 %v1254_v54  ;;  %716 = vmatpush.bf16.msrb.mxu0 %v1014_v5  ;;  %v1195_v54 = vld [vmem:[#allocation6 + $0x188] sm:$0xf0] }
  0x5c   :  { %729 = vmatpush.bf16.msrb.mxu1 %v1078_v9  ;;  %v1198_v59 = vor.u32 %v1383_v53, %v1195_v54 }
  0x5e   :  { %737 = vmatpush.bf16.msrb.mxu2 %v1182_v43 }
  0x5f   :  { %750 = vmatpush.bf16.msrb.mxu3 %v1246_v1  ;;  %717 = vmatpush.bf16.msrb.mxu0 %v1006_v17  ;;  %v1401_v17 = vld [vmem:[#allocation7 + $0x10] sm:$0xff] }
  0x60   :  { %730 = vmatpush.bf16.msrb.mxu1 %v1070_v21  ;;  %v1399_v21 = vld [vmem:[#allocation7] sm:$0xff] }
  0x62   :  { %738 = vmatpush.bf16.msrb.mxu2 %v1174_v10 }
  0x63   :  { %751 = vmatpush.bf16.msrb.mxu3 %v1238_v13  ;;  %v1404_v13 = vld [vmem:[#allocation7 + $0x28] sm:$0xff] }
  0x66   :  { %739 = vmatpush.bf16.msrb.mxu2 %v1166_v22  ;;  %v1411_v22 = vld [vmem:[#allocation7 + $0x60] sm:$0xff] }
  0x67   :  { %752 = vmatpush.bf16.msrb.mxu3 %v1230_v25 }
  0x6a   :  { %740 = vmatpush.bf16.msrb.mxu2 %v1158_v29 }
  0x6b   :  { %753 = vmatpush.bf16.msrb.mxu3 %v1222_v31  ;;  %v1407_v31 = vld [vmem:[#allocation7 + $0x40] sm:$0xff] }
  0x6e   :  { %741 = vmatpush.bf16.msrb.mxu2 %v1150_v37 }
  0x6f   :  { %754 = vmatpush.bf16.msrb.mxu3 %v1214_v38 }
  0x72   :  { %742 = vmatpush.bf16.msrb.mxu2 %v1142_v46 }
  0x73   :  { %755 = vmatpush.bf16.msrb.mxu3 %v1206_v47 }
  0x76   :  { %743 = vmatpush.bf16.msrb.mxu2 %v1134_v57 }
  0x77   :  { %756 = vmatpush.bf16.msrb.mxu3 %v1198_v59 }
  0xac   :  { %v218_v48 = vpop.f32.mrf.mxu2 }
  0xad   :  { %v219_v51 = vadd.f32 %v218_v48, %v117_v44  ;;  %v231_v52 = vpop.f32.mrf.mxu3 }
  0xae   :  { %v232_v55 = vadd.f32 %v231_v52, %v118_v45  ;;  %v335_v45 = vperm.slane %v98_v30, 1 }
  0xaf   :  { %v261_v56 = vmax.f32 %v219_v51, 0.0 }
  0xb0   :  { %v262_v58 = vmax.f32 %v232_v55, 0.0 }
  0xb1   :  { %v265_v60 = vpack.c.bf16 %v261_v56, %v261_v56 }
  0xb2   :  { %v266_v61 = vpack.c.bf16 %v262_v58, %v262_v58 }
  0xb3   :  { %666 = vmatmul.bf16.vlgmr.msra.gmra.mxu0 %v265_v60 }
  0xb4   :  { %679 = vmatmul.bf16.vlgmr.msra.gmra.mxu1 %v266_v61  ;;  %v220_v62 = vpop.f32.mrf.mxu2  ;;  %897 = vmatpush.bf16.msra.mxu0 %v1406_v11 }
  0xb5   :  { %v233_v43 = vpop.f32.mrf.mxu3  ;;  %910 = vmatpush.bf16.msra.mxu1 %v1414_v16 }
  0xb8   :  { %898 = vmatpush.bf16.msra.mxu0 %v1405_v12 }
  0xb9   :  { %911 = vmatpush.bf16.msra.mxu1 %v1413_v18 }
  0xbc   :  { %v244_v1 = vpop.f32.mrf.mxu2  ;;  %899 = vmatpush.bf16.msra.mxu0 %v1404_v13 }
  0xbd   :  { %v245_v2 = vadd.f32 %v244_v1, %v119_v63  ;;  %v257_v3 = vpop.f32.mrf.mxu3  ;;  %912 = vmatpush.bf16.msra.mxu1 %v1412_v20 }
  0xbe   :  { %v258_v4 = vadd.f32 %v257_v3, %v120_v0 }
  0xbf   :  { %v263_v5 = vmax.f32 %v245_v2, 0.0 }
  0xc0   :  { %v264_v6 = vmax.f32 %v258_v4, 0.0  ;;  %900 = vmatpush.bf16.msra.mxu0 %v1403_v14 }
  0xc1   :  { %v267_v7 = vpack.c.bf16 %v263_v5, %v263_v5  ;;  %913 = vmatpush.bf16.msra.mxu1 %v1411_v22 }
  0xc2   :  { %v268_v8 = vpack.c.bf16 %v264_v6, %v264_v6 }
  0xc3   :  { %692 = vmatmul.bf16.vlgmr.msra.gmra.mxu2 %v267_v7  ;;  %718 = vmatmul.bf16.vlgmr.msrb.gmra.mxu0 %v265_v60 }
  0xc4   :  { %705 = vmatmul.bf16.vlgmr.msra.gmra.mxu3 %v268_v8  ;;  %731 = vmatmul.bf16.vlgmr.msrb.gmra.mxu1 %v266_v61  ;;  %v246_v9 = vpop.f32.mrf.mxu2  ;;  %v1426_v61 = vld [vmem:[#allocation9 + $0x6] ss:$0 sm:$0xff] }
  0xc5   :  { %v259_v10 = vpop.f32.mrf.mxu3  ;;  %901 = vmatpush.bf16.msra.mxu0 %v1402_v15  ;;  %914 = vmatpush.bf16.msra.mxu1 %v1410_v23 }
  0xc9   :  { %902 = vmatpush.bf16.msra.mxu0 %v1401_v17  ;;  %915 = vmatpush.bf16.msra.mxu1 %v1409_v26 }
  0xcd   :  { %903 = vmatpush.bf16.msra.mxu0 %v1400_v19  ;;  %916 = vmatpush.bf16.msra.mxu1 %v1408_v27 }
  0xd1   :  { %904 = vmatpush.bf16.msra.mxu0 %v1399_v21  ;;  %917 = vmatpush.bf16.msra.mxu1 %v1407_v31 }
  0xd3   :  { %744 = vmatmul.bf16.vlgmr.msrb.gmra.mxu2 %v267_v7 }
  0xd4   :  { %757 = vmatmul.bf16.vlgmr.msrb.gmra.mxu3 %v268_v8 }
 0x130   :  { %v667_v24 = vpop.f32.mrf.mxu0 }
 0x131   :  { %v680_v25 = vpop.f32.mrf.mxu1  ;;  %v668_v34 = vadd.f32 %v667_v24, %v334_v32 }
 0x133   :  { %v681_v36 = vadd.f32 %v680_v25, %v668_v34 }
 0x138   :  { %v669_v28 = vpop.f32.mrf.mxu0 }
 0x139   :  { %v682_v29 = vpop.f32.mrf.mxu1 }
 0x140   :  { %v719_v33 = vpop.f32.mrf.mxu0 }
 0x141   :  { %v732_v35 = vpop.f32.mrf.mxu1  ;;  %v720_v49 = vadd.f32 %v719_v33, %v335_v45 }
 0x143   :  { %v733_v50 = vadd.f32 %v732_v35, %v720_v49 }
 0x146   :  { %v693_v37 = vpop.f32.mrf.mxu2 }
 0x147   :  { %v694_v38 = vadd.f32 %v693_v37, %v681_v36  ;;  %v706_v39 = vpop.f32.mrf.mxu3 }
 0x148   :  { %v721_v40 = vpop.f32.mrf.mxu0 }
 0x149   :  { %v707_v41 = vadd.f32 %v706_v39, %v694_v38  ;;  %v734_v42 = vpop.f32.mrf.mxu1 }
 0x14b   :  { %v762_v44 = vmax.f32 %v707_v41, 0.0 }
 0x14d   :  { %v764_v46 = vpack.c.bf16 %v762_v44, %v762_v44 }
 0x14e   :  { %v695_v47 = vpop.f32.mrf.mxu2 }
 0x14f   :  { %v708_v48 = vpop.f32.mrf.mxu3  ;;  %905 = vmatmul.bf16.vlgmr.msra.gmra.mxu0 %v764_v46 }
 0x156   :  { %v745_v51 = vpop.f32.mrf.mxu2 }
 0x157   :  { %v746_v52 = vadd.f32 %v745_v51, %v733_v50  ;;  %v758_v53 = vpop.f32.mrf.mxu3 }
 0x159   :  { %v759_v54 = vadd.f32 %v758_v53, %v746_v52 }
 0x15b   :  { %v763_v55 = vmax.f32 %v759_v54, 0.0 }
 0x15d   :  { %v765_v56 = vpack.c.bf16 %v763_v55, %v763_v55 }
 0x15e   :  { %v747_v57 = vpop.f32.mrf.mxu2 }
 0x15f   :  { %v760_v58 = vpop.f32.mrf.mxu3  ;;  %918 = vmatmul.bf16.vlgmr.msra.gmra.mxu1 %v765_v56 }
 0x1cc   :  { %v906_v59 = vpop.f32.mrf.mxu0 }
 0x1cd   :  { %v907_v62 = vadd.f32 %v1426_v61, %v906_v59 }
 0x1d4   :  { %v908_v60 = vpop.f32.mrf.mxu0 }
 0x1dc   :  { %v919_v43 = vpop.f32.mrf.mxu1 }
 0x1dd   :  { %v920_v63 = vadd.f32 %v919_v43, %v907_v62 }
 0x1df   :  { %923 = vst [vmem:[%s1627_s5] sm:$0xff] %v920_v63 }
 0x1e4   :  { %v921_v0 = vpop.f32.mrf.mxu1 }
 0x1e5   :  { %928 = vsyncpa [#allocation3], 1 }
 0x1e6   :  { %929 = vsyncpa [#allocation5], 1 }
 0x1e7   :  { %930 = vsyncpa [#allocation8], 1 }

</bundles_post_ra>
